<compile_context>
chip_gen: v7x
topology: tpu7x:2x2x1
jax: 0.10.0
libtpu: 0.0.40
codegen_flags: <defaults>
</compile_context>

<pallas_src>
import functools

import jax
import jax.numpy as jnp
from jax.experimental import pallas as pl
from jax.experimental.pallas import tpu as pltpu


def _pad128(n):
    return max(128, ((n + 127) // 128) * 128)


# ----------------------------------------------------------------------------
# Pallas kernel: whole MLP fused into a single program.
#   refs = (x_ref, w0_ref, w1_ref, ..., b_all_ref, o_ref)
#   plan = tuple of ("relu",) | ("linear", n_store, fuse_relu)   (static)
# ----------------------------------------------------------------------------
def _fused_mlp_kernel(*refs, plan):
    x_ref = refs[0]
    o_ref = refs[-1]
    b_ref = refs[-2]                 # stacked biases (L, maxN) f32
    w_refs = refs[1:-2]

    h = x_ref[...].astype(jnp.float32)   # (tm, in_dim) f32
    wi = 0
    for op in plan:
        if op[0] == "relu":              # standalone ReLU
            h = jnp.maximum(h, 0.0)
        else:
            _, n_store, fuse_relu = op
            w = w_refs[wi][...]          # bf16 (k_store, n_store)
            # bf16 MXU operands, f32 accumulator; bias + ReLU epilogue in f32.
            acc = jnp.dot(h.astype(jnp.bfloat16), w,
                          preferred_element_type=jnp.float32)
            b = b_ref[pl.ds(wi, 1), pl.ds(0, n_store)]   # (1, n_store) f32
            acc = acc + b
            if fuse_relu:
                acc = jnp.maximum(acc, 0.0)
            h = acc
            wi += 1
    o_ref[...] = h.astype(o_ref.dtype)


def _make_forward(plan, out_dim):
    kernel = functools.partial(_fused_mlp_kernel, plan=plan)

    def forward(x, weights, bias_all):
        M, in_dim = x.shape

        # Batch tiling: stream row tiles for large M (parallel grid -> both
        # v7x TensorCores + DMA/compute overlap); single program otherwise.
        # TODO(synk): bucket M to a small set of sizes in serving loops to
        # avoid a retrace/recompile per distinct batch size.
        if M >= 512 and M % 256 == 0:
            tm = 256
        elif M >= 256 and M % 128 == 0:
            tm = 128
        else:
            tm = M                      # full-array block: always legal
        grid = (M // tm,)

        args = [x]
        in_specs = [pl.BlockSpec((tm, in_dim), lambda i: (i, 0))]
        for w in weights:
            args.append(w)
            # Constant index_map -> weight stays VMEM-resident across steps.
            in_specs.append(pl.BlockSpec(w.shape, lambda i: (0, 0)))
        args.append(bias_all)
        in_specs.append(pl.BlockSpec(bias_all.shape, lambda i: (0, 0)))

        # Scheduler hint.
        flops = 2 * M * sum(int(w.shape[0]) * int(w.shape[1]) for w in weights)
        bytes_accessed = (x.size * x.dtype.itemsize
                          + sum(w.size * 2 for w in weights)      # bf16
                          + bias_all.size * 4
                          + M * out_dim * 4)

        # VMEM budget: resident weights/bias + double-buffered x/out tiles +
        # headroom for f32 intermediates.  Keeps big configs honest on v5e
        # (16 MiB default scoped) and v7x (64 MiB physical).
        # TODO(synk): fall back to a K/N-tiled grid with an f32 accumulator
        # scratch when resident weights alone exceed the VMEM budget.
        max_n = max([int(w.shape[1]) for w in weights] + [out_dim, 128])
        resident = (sum(w.size * 2 for w in weights) + bias_all.size * 4
                    + 2 * tm * in_dim * 4 + 2 * tm * out_dim * 4
                    + 4 * tm * max_n * 4)
        vmem_limit = int(min(64 << 20, max(16 << 20, 2 * resident)))

        return pl.pallas_call(
            kernel,
            out_shape=jax.ShapeDtypeStruct((M, out_dim), jnp.float32),
            grid=grid,
            in_specs=in_specs,
            out_specs=pl.BlockSpec((tm, out_dim), lambda i: (i, 0)),
            compiler_params=pltpu.CompilerParams(
                dimension_semantics=("parallel",),
                vmem_limit_bytes=vmem_limit),
            cost_estimate=pl.CostEstimate(
                flops=flops, transcendentals=0, bytes_accessed=bytes_accessed),
        )(*args)

    return forward


# ----------------------------------------------------------------------------
# NeuralNetwork: JAX/Pallas equivalent of the PyTorch nn.Sequential MLP
# ----------------------------------------------------------------------------
class NeuralNetwork:
    """Sequential MLP from cfg['architecture'] (Linear / ReLU), fused into one
    Pallas kernel per forward pass."""

    def __init__(self, cfg, input_dim, output_dim, key):
        arch = cfg["architecture"]

        # Pass 1: resolve layer specs so we know which linear is last (its N
        # stays unpadded so the kernel writes the exact output shape).
        items = []
        for item in arch:
            name = item[0]
            if "linear" in name:
                in_f = input_dim if item[1] == "input_dim" else item[1]
                out_f = output_dim if item[2] == "output_dim" else item[2]
                items.append(("linear", in_f, out_f))
            elif "relu" in name:
                items.append(("relu",))
            else:
                # TODO(synk): cfg item types other than linear/relu unsupported
                raise ValueError(f"unsupported layer spec: {item}")
        linear_idxs = [i for i, it in enumerate(items) if it[0] == "linear"]
        last_linear = linear_idxs[-1] if linear_idxs else -1

        self.plan = []
        self.weights_f32 = []    # unpadded f32 copies (reference)
        self.biases_f32 = []
        self.weights = []        # padded bf16 [K_store, N_store]
        bias_rows = []           # (bias, out_f) for the stacked bias array

        cur_store = input_dim    # storage width of h entering the next layer
        cur_real = input_dim
        i = 0
        while i < len(items):
            it = items[i]
            if it[0] == "relu":
                self.plan.append(("relu",))
                i += 1
                continue
            _, in_f, out_f = it
            assert in_f == cur_real, "layer in_features mismatch in cfg"
            key, kw, kb = jax.random.split(key, 3)
            # PyTorch nn.Linear default init: U(-1/sqrt(in), 1/sqrt(in))
            bound = 1.0 / float(in_f) ** 0.5
            w = jax.random.uniform(kw, (in_f, out_f), jnp.float32, -bound, bound)
            b = jax.random.uniform(kb, (out_f,), jnp.float32, -bound, bound)
            self.weights_f32.append(w)
            self.biases_f32.append(b)

            # Storage layout: K matches incoming activation width; hidden N is
            # lane-dense (multiple of 128); last linear's N stays exact.
            k_store = cur_store
            n_store = out_f if i == last_linear else _pad128(out_f)
            w_p = jnp.zeros((k_store, n_store), jnp.bfloat16)
            w_p = w_p.at[:in_f, :out_f].set(w.astype(jnp.bfloat16))
            self.weights.append(w_p)
            bias_rows.append((b, out_f))

            fuse = (i + 1 < len(items)) and items[i + 1][0] == "relu"
            self.plan.append(("linear", n_store, fuse))
            cur_store, cur_real = n_store, out_f
            i += 2 if fuse else 1

        # Stack biases into a single operand (fewer DMA descriptors).
        if bias_rows:
            max_n = max(int(w.shape[1]) for w in self.weights)
            b_all = jnp.zeros((len(bias_rows), max_n), jnp.float32)
            for li, (b, out_f) in enumerate(bias_rows):
                b_all = b_all.at[li, :out_f].set(b)
        else:
            b_all = jnp.zeros((1, 128), jnp.float32)   # unused dummy
        self.bias_all = b_all

        self.plan = tuple(self.plan)
        self.input_dim = input_dim
        self.out_dim = cur_real
        self._forward = jax.jit(_make_forward(self.plan, self.out_dim))

    def __call__(self, x):
        return self._forward(x, self.weights, self.bias_all)


# Pure-JAX references for sanity checks.
def _reference_forward_bf16(model, x):
    """Same math as the kernel (bf16 MXU operands, f32 accumulate/epilogue)."""
    h = x.astype(jnp.float32)
    wi = 0
    for op in model.plan:
        if op[0] == "relu":
            h = jnp.maximum(h, 0.0)
        else:
            w = model.weights_f32[wi].astype(jnp.bfloat16)
            b = model.biases_f32[wi]
            h = jnp.dot(h.astype(jnp.bfloat16), w,
                        preferred_element_type=jnp.float32) + b
            if op[2]:
                h = jnp.maximum(h, 0.0)
            wi += 1
    return h


def _reference_forward_f32(model, x):
    h = x
    wi = 0
    for op in model.plan:
        if op[0] == "relu":
            h = jnp.maximum(h, 0.0)
        else:
            h = h @ model.weights_f32[wi] + model.biases_f32[wi]
            if op[2]:
                h = jnp.maximum(h, 0.0)
            wi += 1
    return h


if __name__ == "__main__":
    key = jax.random.PRNGKey(0)
    k_model, k_x, k_x2 = jax.random.split(key, 3)

    batch = 8
    input_dim = 32
    hidden = 64
    output_dim = 16

    cfg = {
        "architecture": [
            ["linear1", "input_dim", hidden],
            ["relu1"],
            ["linear2", hidden, hidden],
            ["relu2"],
            ["linear3", hidden, "output_dim"],
        ]
    }

    model = NeuralNetwork(cfg, input_dim, output_dim, k_model)
    x = jax.random.normal(k_x, (batch, input_dim), jnp.float32)

    out = jax.block_until_ready(model(x))
    assert out.shape == (batch, output_dim), out.shape

    # Exact-math check against a reference using the same bf16-in/f32-acc path.
    ref_bf16 = _reference_forward_bf16(model, x)
    assert jnp.allclose(out, ref_bf16, atol=1e-3, rtol=1e-3), \
        "mismatch vs bf16 reference"

    # Semantics check against the original f32 PyTorch-equivalent math.
    ref_f32 = _reference_forward_f32(model, x)
    assert float(jnp.max(jnp.abs(out - ref_f32))) < 0.1, \
        "drifted too far from f32 semantics"

    # Non-aligned batch (full-array block path) still runs and matches.
    x2 = jax.random.normal(k_x2, (5, input_dim), jnp.float32)
    out2 = jax.block_until_ready(model(x2))
    assert out2.shape == (5, output_dim)
    assert jnp.allclose(out2, _reference_forward_bf16(model, x2),
                        atol=1e-3, rtol=1e-3), "mismatch for odd batch"

    print("KERNEL_OK")
</pallas_src>

<mosaic_0001>
module attributes {stable_mosaic.version = 11 : i64} {
  func.func @_fused_mlp_kernel(%arg0: i32, %arg1: memref<8x32xf32, #tpu.memory_space<vmem>>, %arg2: memref<32x128xbf16, #tpu.memory_space<vmem>>, %arg3: memref<128x128xbf16, #tpu.memory_space<vmem>>, %arg4: memref<128x16xbf16, #tpu.memory_space<vmem>>, %arg5: memref<3x128xf32, #tpu.memory_space<vmem>>, %arg6: memref<8x16xf32, #tpu.memory_space<vmem>>) attributes {dimension_semantics = [#tpu.dimension_semantics<parallel>], iteration_bounds = array<i64: 1>, scalar_prefetch = 0 : i64, scratch_operands = 0 : i64, tpu.core_type = #tpu.core_type<tc>, window_params = [{transform_indices = @transform_0, window_bounds = array<i64: 8, 32>}, {pipeline_mode = #tpu.pipeline_mode<synchronous>, transform_indices = @transform_1, window_bounds = array<i64: 32, 128>}, {pipeline_mode = #tpu.pipeline_mode<synchronous>, transform_indices = @transform_2, window_bounds = array<i64: 128, 128>}, {pipeline_mode = #tpu.pipeline_mode<synchronous>, transform_indices = @transform_3, window_bounds = array<i64: 128, 16>}, {pipeline_mode = #tpu.pipeline_mode<synchronous>, transform_indices = @transform_4, window_bounds = array<i64: 3, 128>}, {transform_indices = @transform_5, window_bounds = array<i64: 8, 16>}]} {
    %c0 = arith.constant 0 : index
    %c0_0 = arith.constant 0 : index
    %0 = vector.load %arg1[%c0, %c0_0] : memref<8x32xf32, #tpu.memory_space<vmem>>, vector<8x32xf32>
    %c0_1 = arith.constant 0 : index
    %c0_2 = arith.constant 0 : index
    %1 = vector.load %arg2[%c0_1, %c0_2] : memref<32x128xbf16, #tpu.memory_space<vmem>>, vector<32x128xbf16>
    %2 = arith.truncf %0 : vector<8x32xf32> to vector<8x32xbf16>
    %cst = arith.constant dense<0.000000e+00> : vector<8x128xf32>
    %3 = tpu.matmul %2, %1, %cst {dimension_numbers = #tpu.dot_dimension_numbers<[1], [0], [0], [1], [0, 0, 1, 1], [], []>} : vector<8x32xbf16>, vector<32x128xbf16>, vector<8x128xf32> -> vector<8x128xf32>
    %c0_3 = arith.constant 0 : index
    %c0_4 = arith.constant 0 : index
    %4 = vector.load %arg5[%c0_3, %c0_4] : memref<3x128xf32, #tpu.memory_space<vmem>>, vector<1x128xf32>
    %5 = vector.broadcast %4 : vector<1x128xf32> to vector<8x128xf32>
    %6 = arith.addf %3, %5 : vector<8x128xf32>
    %cst_5 = arith.constant 0.000000e+00 : f32
    %7 = vector.broadcast %cst_5 : f32 to vector<8x128xf32>
    %8 = arith.maximumf %6, %7 : vector<8x128xf32>
    %c0_6 = arith.constant 0 : index
    %c0_7 = arith.constant 0 : index
    %9 = vector.load %arg3[%c0_6, %c0_7] : memref<128x128xbf16, #tpu.memory_space<vmem>>, vector<128x128xbf16>
    %10 = arith.truncf %8 : vector<8x128xf32> to vector<8x128xbf16>
    %cst_8 = arith.constant dense<0.000000e+00> : vector<8x128xf32>
    %11 = tpu.matmul %10, %9, %cst_8 {dimension_numbers = #tpu.dot_dimension_numbers<[1], [0], [0], [1], [0, 0, 1, 1], [], []>} : vector<8x128xbf16>, vector<128x128xbf16>, vector<8x128xf32> -> vector<8x128xf32>
    %c1 = arith.constant 1 : index
    %c0_9 = arith.constant 0 : index
    %12 = vector.load %arg5[%c1, %c0_9] : memref<3x128xf32, #tpu.memory_space<vmem>>, vector<1x128xf32>
    %13 = vector.broadcast %12 : vector<1x128xf32> to vector<8x128xf32>
    %14 = arith.addf %11, %13 : vector<8x128xf32>
    %cst_10 = arith.constant 0.000000e+00 : f32
    %15 = vector.broadcast %cst_10 : f32 to vector<8x128xf32>
    %16 = arith.maximumf %14, %15 : vector<8x128xf32>
    %c0_11 = arith.constant 0 : index
    %c0_12 = arith.constant 0 : index
    %17 = vector.load %arg4[%c0_11, %c0_12] : memref<128x16xbf16, #tpu.memory_space<vmem>>, vector<128x16xbf16>
    %18 = arith.truncf %16 : vector<8x128xf32> to vector<8x128xbf16>
    %cst_13 = arith.constant dense<0.000000e+00> : vector<8x16xf32>
    %19 = tpu.matmul %18, %17, %cst_13 {dimension_numbers = #tpu.dot_dimension_numbers<[1], [0], [0], [1], [0, 0, 1, 1], [], []>} : vector<8x128xbf16>, vector<128x16xbf16>, vector<8x16xf32> -> vector<8x16xf32>
    %c2 = arith.constant 2 : index
    %c0_14 = arith.constant 0 : index
    %20 = vector.load %arg5[%c2, %c0_14] : memref<3x128xf32, #tpu.memory_space<vmem>>, vector<1x16xf32>
    %21 = vector.broadcast %20 : vector<1x16xf32> to vector<8x16xf32>
    %22 = arith.addf %19, %21 : vector<8x16xf32>
    %c0_15 = arith.constant 0 : index
    %c0_16 = arith.constant 0 : index
    %23 = vector.load %arg6[%c0_15, %c0_16] : memref<8x16xf32, #tpu.memory_space<vmem>>, vector<8x16xf32>
    tpu.vector_store %arg6[%c0_15, %c0_16], %22 {strides = array<i32>} : memref<8x16xf32, #tpu.memory_space<vmem>>, vector<8x16xf32>,
    return
  }
  func.func @transform_0(%arg0: i32) -> (i32, i32) {
    %c0_i32 = arith.constant 0 : i32
    %c0_i32_0 = arith.constant 0 : i32
    return %arg0, %c0_i32 : i32, i32
  }
  func.func @transform_1(%arg0: i32) -> (i32, i32) {
    %c0_i32 = arith.constant 0 : i32
    %c0_i32_0 = arith.constant 0 : i32
    %c0_i32_1 = arith.constant 0 : i32
    return %c0_i32, %c0_i32_0 : i32, i32
  }
  func.func @transform_2(%arg0: i32) -> (i32, i32) {
    %c0_i32 = arith.constant 0 : i32
    %c0_i32_0 = arith.constant 0 : i32
    %c0_i32_1 = arith.constant 0 : i32
    return %c0_i32, %c0_i32_0 : i32, i32
  }
  func.func @transform_3(%arg0: i32) -> (i32, i32) {
    %c0_i32 = arith.constant 0 : i32
    %c0_i32_0 = arith.constant 0 : i32
    %c0_i32_1 = arith.constant 0 : i32
    return %c0_i32, %c0_i32_0 : i32, i32
  }
  func.func @transform_4(%arg0: i32) -> (i32, i32) {
    %c0_i32 = arith.constant 0 : i32
    %c0_i32_0 = arith.constant 0 : i32
    %c0_i32_1 = arith.constant 0 : i32
    return %c0_i32, %c0_i32_0 : i32, i32
  }
  func.func @transform_5(%arg0: i32) -> (i32, i32) {
    %c0_i32 = arith.constant 0 : i32
    %c0_i32_0 = arith.constant 0 : i32
    return %arg0, %c0_i32 : i32, i32
  }
}

</mosaic_0001>

<bundles_post_ra>
// kernel: forward.1
= control target key start
LH: loop header
LB: loop body
LE: loop exit
PB: predicated region body
PF: predicated region fallthrough
CT: control target
= control target key end

     0   :  { %10 = vsyncpa [#allocation3], 0  ;;  %s649_s0 = inlined_call_operand.vmem [shape: f32[8,32], index: 0, kind: input, shape index: {}]   ;;  %s650_s1 = inlined_call_operand.hbm [shape: bf16[32,128], index: 1, kind: input, shape index: {}]   ;;  %s651_s2 = inlined_call_operand.vmem [shape: bf16[128,128], index: 2, kind: input, shape index: {}]   ;;  %s652_s3 = inlined_call_operand.vmem [shape: bf16[128,16], index: 3, kind: input, shape index: {}]   ;;  %s653_s4 = inlined_call_operand.vmem [shape: f32[3,128], index: 4, kind: input, shape index: {}]   ;;  %s654_s5 = inlined_call_operand.hbm [shape: f32[8,16], index: 5, kind: output, shape index: {}]  }
   0x1   :  { %11 = vsyncpa [#allocation4], 0  ;;  %s505_s18 = smov [#allocation2]   ;;  %s457_s22 = scalar_lea.hbm %s650_s1, 256 }
   0x2   :  { %s19_s19 = sshll.u32 %s505_s18, 4  ;;  %p458_p0 = scmp.ne.s32.totalorder %s650_s1, %s457_s22  ;;  %s20_s19 = int_to_ptr.vmem [resolvable:$true] %s19_s19 }
   0x3   :  { %p461_p1 = scmp.lt.u32.totalorder %s457_s22, %s650_s1 }
   0x5   :  { %p463_p2 = pnand %p461_p1, %p458_p0 }
   0x7   :  { %466 = shalt.err (!%p463_p2)
}
   0x8   :  { %s467_s27 = scalar_lea.vmem %s20_s19, 256  ;;  %p472_p4 = scmp.lt.s32.totalorder %s20_s19, %s20_s19 }
   0x9   :  { %p468_p3 = scmp.ne.s32.totalorder %s20_s19, %s467_s27  ;;  %p473_p5 = scmp.lt.s32.totalorder %s467_s27, %s467_s27 }
   0xb   :  { %p474_p6 = por %p473_p5, %p472_p4 }
   0xd   :  { %p475_p7 = pnand %p474_p6, %p468_p3 }
   0xf   :  { %478 = shalt.err (!%p475_p7)
}
  0x10   :  { %s506_s28 = smov 64   ;;  %s507_s29 = smov 4  }
  0x11   :  { %25 = dma.hbm_to_vmem [thread:$0]  %s650_s1, 256, %s20_s19, [#allocation3], %s506_s28, %s506_s28, %s507_s29  }
  0x12   :  { %501 = dma.done.wait [#allocation3], 256  }
  0x13   :  { %502 = vsyncadd [#allocation3], 4294967040  ;;  %v508_v0 = vmov 0.0   ;;  %vm509_vm0 = vmmov 0   ;;  %v439_v1 = vld [vmem:[#allocation2] sm:$0xff]   ;;  %v440_v2 = vld [vmem:[#allocation2 + $0x8] sm:$0xff]  }
  0x14   :  { %385 = vmatprep.subr.bf16.mxu0 %v508_v0  ;;  %389 = vmatprep.mubr.msk.bf16.mxu0 %vm509_vm0, %v508_v0  ;;  %v36_v3 = vld [vmem:[%s649_s0] sm:$0xff]  ;;  %v442_v6 = vld [vmem:[%s651_s2 + $0x8] sm:$0xff]   ;;  %vm59_vm1 = vcmask 261120   ;;  %v443_v7 = vld [vmem:[%s651_s2 + $0x10] sm:$0xff]   ;;  %s510_s17 = smov [#allocation5]   ;;  %vm325_vm2 = vcmask 130048  }
  0x15   :  { %393 = vmatprep.subr.bf16.mxu1 %v508_v0  ;;  %409 = vmatprep.mubr.msk.bf16.mxu1 %vm509_vm0, %v508_v0  ;;  %v441_v4 = vld [vmem:[%s651_s2] sm:$0xff]   ;;  %v41_v5 = vpack.c.bf16 %v36_v3, %v36_v3  ;;  %v444_v8 = vld [vmem:[%s651_s2 + $0x18] sm:$0xff]   ;;  %v446_v10 = vld [vmem:[%s651_s2 + $0x28] sm:$0xff]   ;;  %s333_s18 = sshll.u32 %s510_s17, 4  ;;  %s334_s18 = int_to_ptr.vmem [resolvable:$true] %s333_s18 }
  0x16   :  { %386 = vmatpush3.bf16.msra.mxu0 %v439_v1  ;;  %394 = vmatpush3.bf16.msra.mxu1 %v441_v4  ;;  %v445_v9 = vld [vmem:[%s651_s2 + $0x20] sm:$0xff]   ;;  %v447_v11 = vld [vmem:[%s651_s2 + $0x30] sm:$0xff]   ;;  %v448_v12 = vld [vmem:[%s651_s2 + $0x38] sm:$0xff]   ;;  %p484_p9 = scmp.lt.s32.totalorder %s334_s18, %s334_s18 }
  0x17   :  { %387 = vmatprep.subr.bf16.mxu0 %v508_v0  ;;  %395 = vmatprep.subr.bf16.mxu1 %v508_v0  ;;  %v449_v13 = vld [vmem:[%s652_s3] sm:$0xff]   ;;  %v450_v14 = vld [vmem:[%s652_s3 + $0x8] sm:$0xff]   ;;  %v451_v15 = vld [vmem:[%s652_s3 + $0x10] sm:$0xff]  }
  0x18   :  { %v452_v16 = vld [vmem:[%s652_s3 + $0x18] sm:$0xff]   ;;  %v453_v17 = vld [vmem:[%s652_s3 + $0x20] sm:$0xff]   ;;  %v454_v18 = vld [vmem:[%s652_s3 + $0x28] sm:$0xff]  }
  0x19   :  { %v342_v19 = vld [vmem:[%s653_s4] ss:$0 sm:$0xff]  ;;  %v455_v27 = vld [vmem:[%s652_s3 + $0x30] sm:$0xff]   ;;  %v456_v28 = vld [vmem:[%s652_s3 + $0x38] sm:$0xff]   ;;  %s479_s3 = scalar_lea.vmem %s334_s18, 128 }
  0x1a   :  { %388 = vmatpush3.bf16.msra.mxu0 %v440_v2  ;;  %396 = vmatpush3.bf16.msra.mxu1 %v442_v6  ;;  %v346_v29 = vld [vmem:[%s653_s4 + $0x1] ss:$0 sm:$0xff]  ;;  %v355_v37 = vld [vmem:[%s653_s4 + $0x2] ss:$0 sm:$0xff]  ;;  %p480_p8 = scmp.ne.s32.totalorder %s334_s18, %s479_s3  ;;  %p485_p10 = scmp.lt.s32.totalorder %s479_s3, %s479_s3 }
  0x1b   :  { %413 = vmatprep.subr.bf16.mxu0 %v508_v0  ;;  %397 = vmatprep.subr.bf16.mxu1 %v508_v0 }
  0x1c   :  { %p486_p11 = por %p485_p10, %p484_p9 }
  0x1d   :  { %390 = vmatmul.mubr.msk.bf16.vlgmr.msra.gmra.mrb[0].mxu0 %vm59_vm1, %v41_v5 }
  0x1e   :  { %429 = vmatprep.mubr.msk.bf16.mxu0 %vm509_vm0, %v508_v0  ;;  %398 = vmatpush3.bf16.msra.mxu1 %v443_v7  ;;  %p487_p12 = pnand %p486_p11, %p480_p8 }
  0x1f   :  { %399 = vmatprep.subr.bf16.mxu1 %v508_v0  ;;  %414 = vmatpush3.bf16.msra.mxu0 %v449_v13 }
  0x20   :  { %415 = vmatprep.subr.bf16.mxu0 %v508_v0 }
  0x22   :  { %400 = vmatpush3.bf16.msra.mxu1 %v444_v8 }
  0x23   :  { %401 = vmatprep.subr.bf16.mxu1 %v508_v0  ;;  %416 = vmatpush3.bf16.msra.mxu0 %v450_v14 }
  0x24   :  { %417 = vmatprep.subr.bf16.mxu0 %v508_v0 }
  0x26   :  { %402 = vmatpush3.bf16.msra.mxu1 %v445_v9 }
  0x27   :  { %403 = vmatprep.subr.bf16.mxu1 %v508_v0  ;;  %418 = vmatpush3.bf16.msra.mxu0 %v451_v15 }
  0x28   :  { %419 = vmatprep.subr.bf16.mxu0 %v508_v0 }
  0x2a   :  { %404 = vmatpush3.bf16.msra.mxu1 %v446_v10 }
  0x2b   :  { %405 = vmatprep.subr.bf16.mxu1 %v508_v0  ;;  %420 = vmatpush3.bf16.msra.mxu0 %v452_v16 }
  0x2c   :  { %421 = vmatprep.subr.bf16.mxu0 %v508_v0 }
  0x2e   :  { %406 = vmatpush3.bf16.msra.mxu1 %v447_v11 }
  0x2f   :  { %407 = vmatprep.subr.bf16.mxu1 %v508_v0  ;;  %422 = vmatpush3.bf16.msra.mxu0 %v453_v17 }
  0x30   :  { %423 = vmatprep.subr.bf16.mxu0 %v508_v0 }
  0x32   :  { %408 = vmatpush3.bf16.msra.mxu1 %v448_v12 }
  0x33   :  { %424 = vmatpush3.bf16.msra.mxu0 %v454_v18 }
  0x34   :  { %425 = vmatprep.subr.bf16.mxu0 %v508_v0 }
  0x37   :  { %426 = vmatpush3.bf16.msra.mxu0 %v455_v27 }
  0x38   :  { %427 = vmatprep.subr.bf16.mxu0 %v508_v0 }
  0x3b   :  { %428 = vmatpush3.bf16.msra.mxu0 %v456_v28 }
  0xf0   :  { %v97_v20 = vpop.f32.mrb[0].mxu0 }
  0xf1   :  { %v98_v21 = vadd.f32 %v342_v19, %v97_v20  ;;  %v391_v22 = vpop.f32.mrb[1].mxu0 }
  0xf2   :  { %v100_v23 = vpop.f32.mrb[2].mxu0 }
  0xf3   :  { %v103_v24 = vmax.f32 %v98_v21, 0.0  ;;  %v392_v25 = vpop.f32.mrb[3].mxu0 }
  0xf5   :  { %v120_v26 = vpack.c.bf16 %v103_v24, %v103_v24 }
  0xf7   :  { %410 = vmatmul.mubr.bf16.vlgmr.msra.gmra.mrb[0].mxu1 %v120_v26 }
 0x1ca   :  { %v208_v30 = vpop.f32.mrb[0].mxu1 }
 0x1cb   :  { %v209_v31 = vadd.f32 %v346_v29, %v208_v30  ;;  %v411_v32 = vpop.f32.mrb[1].mxu1 }
 0x1cc   :  { %v211_v33 = vpop.f32.mrb[2].mxu1 }
 0x1cd   :  { %v214_v34 = vmax.f32 %v209_v31, 0.0  ;;  %v412_v35 = vpop.f32.mrb[3].mxu1 }
 0x1cf   :  { %v231_v36 = vpack.c.bf16 %v214_v34, %v214_v34 }
 0x1d1   :  { %430 = vmatmul.mubr.bf16.vlgmr.msra.gmra.mrb[4].mxu0 %v231_v36 }
 0x2a4   :  { %v319_v38 = vpop.f32.mrb[4].mxu0 }
 0x2a5   :  { %v320_v39 = vadd.f32 %v355_v37, %v319_v38  ;;  %v431_v40 = vpop.f32.mrb[5].mxu0 }
 0x2a6   :  { %v322_v41 = vpop.f32.mrb[6].mxu0 }
 0x2a7   :  { %v432_v42 = vpop.f32.mrb[7].mxu0  ;;  %326 = vst.msk [vmem:[#allocation5] sm:$0xff] %vm325_vm2, %v320_v39 }
 0x2a8   :  { %490 = shalt.err (!%p487_p12)
}
 0x2a9   :  { %s491_s4 = scalar_lea.hbm %s654_s5, 128 }
 0x2aa   :  { %p492_p13 = scmp.ne.s32.totalorder %s654_s5, %s491_s4  ;;  %p495_p0 = scmp.lt.u32.totalorder %s491_s4, %s654_s5 }
 0x2ac   :  { %p497_p1 = pnand %p495_p0, %p492_p13 }
 0x2ae   :  { %500 = shalt.err (!%p497_p1)
}
 0x2af   :  { %336 = dma.vmem_to_hbm [thread:$0]  %s334_s18, 128, %s654_s5, [#allocation4]  }
 0x2b0   :  { %503 = dma.done.wait [#allocation4], 128  }
 0x2b1   :  { %504 = vsyncadd [#allocation4], 4294967168 }
 0x2b2   :  { %340 = vsyncpa [#allocation3], 1 }
 0x2b3   :  { %341 = vsyncpa [#allocation4], 1 }

</bundles_post_ra>
